<compile_context>
chip_gen: v7x
topology: tpu7x:2x2x1
jax: 0.10.0
libtpu: 0.0.40
codegen_flags: <defaults>
</compile_context>

<pallas_src>
import jax
import jax.numpy as jnp
from jax.experimental import pallas as pl
from jax.experimental.pallas import tpu as pltpu


def _round_up(x, m):
    return ((x + m - 1) // m) * m


def _vmem_ceiling_bytes():
    """~85% of physical VMEM (per-core); conservative 64 MiB fallback (v7x)."""
    cap = 0
    try:
        cap = int(getattr(pltpu.get_tpu_info(), "vmem_capacity_bytes", 0))
    except Exception:
        cap = 0
    if cap <= 0:
        cap = 64 * 1024 * 1024
    return int(cap * 0.85)


def _film_kernel(cond_ref, feat_ref, w_ref, b_ref, out_ref):
    # cond_ref: (tm, Dp)        feat_ref: (tm, tn)
    # w_ref:    (2, Dp, tn)  column tile of [Wg^T, Wb^T]     b_ref: (2, 1, tn)
    lhs = cond_ref[...]
    if lhs.dtype != w_ref.dtype:
        lhs = lhs.astype(w_ref.dtype)        # in-kernel cast (hidden under MXU/DMA)
    gamma = jnp.dot(lhs, w_ref[0], preferred_element_type=jnp.float32) + b_ref[0]
    beta = jnp.dot(lhs, w_ref[1], preferred_element_type=jnp.float32) + b_ref[1]
    out_ref[...] = (gamma * feat_ref[...].astype(jnp.float32) + beta).astype(out_ref.dtype)


def film_prepare_params(w_gamma, b_gamma, w_beta, b_beta, *, param_dtype=None):
    """Pad/stack the two nn.Linear parameter sets ONCE (call at init, not per step).

    w_gamma, w_beta: (D, D) in PyTorch nn.Linear layout (out_features, in_features).
    Returns:
      w_stacked: (2, Dp, Dp) = [Wg^T, Wb^T], zero-padded, in param_dtype
                 (use jnp.bfloat16 on v6e/v7x for the fast MXU path).
      b_stacked: (2, 1, Dp) float32, zero-padded.
    """
    w_gamma = jnp.asarray(w_gamma)
    w_beta = jnp.asarray(w_beta)
    b_gamma = jnp.asarray(b_gamma)
    b_beta = jnp.asarray(b_beta)
    D = w_gamma.shape[0]
    Dp = _round_up(D, 128)
    if param_dtype is None:
        param_dtype = w_gamma.dtype
    pad_w = lambda w: jnp.pad(w.T, ((0, Dp - D), (0, Dp - D)))   # x @ W^T like nn.Linear
    pad_b = lambda b: jnp.pad(b, (0, Dp - D))
    w_stacked = jnp.stack([pad_w(w_gamma), pad_w(w_beta)]).astype(param_dtype)
    b_stacked = (jnp.stack([pad_b(b_gamma), pad_b(b_beta)])
                 .reshape(2, 1, Dp).astype(jnp.float32))
    return w_stacked, b_stacked


def film_layer(features, cond, w_stacked, b_stacked, *, tm=512):
    """FiLM forward: out = (cond @ Wg^T + bg) * features + (cond @ Wb^T + bb).

    features, cond: (B, S, D), streamed from HBM in the caller dtype (no wrapper casts).
    w_stacked, b_stacked: from film_prepare_params (built once at parameter init).
    tm: requested row tile of B*S per grid step (auto clamped / VMEM-fitted).
    """
    B, S, D = features.shape
    assert cond.shape == (B, S, D)
    out_dtype = features.dtype

    Dp = w_stacked.shape[-1]
    assert w_stacked.shape == (2, Dp, Dp) and Dp % 128 == 0 and Dp >= D
    assert b_stacked.shape == (2, 1, Dp)

    in_bytes = jnp.dtype(features.dtype).itemsize
    out_bytes = jnp.dtype(out_dtype).itemsize
    w_bytes = jnp.dtype(w_stacked.dtype).itemsize

    M = B * S
    feat2d = features.reshape(M, D)
    cond2d = cond.reshape(M, D)
    if Dp != D:
        # Keep an explicit zero-pad on the channel/K dim (garbage in K padding times
        # zero-padded weight rows could be NaN).  Row axis is never padded.
        cond2d = jnp.pad(cond2d, ((0, 0), (0, Dp - D)))
        feat2d = jnp.pad(feat2d, ((0, 0), (0, Dp - D)))

    # ---------------- tiling -------------------------------------------------
    sub = 16 if jnp.dtype(features.dtype) == jnp.dtype(jnp.bfloat16) else 8
    ceiling = _vmem_ceiling_bytes()
    headroom = 4 * 1024 * 1024

    # Output-channel tile: bound the resident weight block (v7x: only 64 MiB VMEM).
    weight_budget = min(12 * 1024 * 1024, ceiling // 4)
    max_cols = max(128, (weight_budget // max(1, 2 * Dp * w_bytes)) // 128 * 128)
    tn = min(Dp, max_cols)

    # Row tile: large to amortize per-step overhead; clamp so the row grid has >= 2
    # steps (v7x megacore sharding of the "parallel" axis) and never exceeds M.
    tm = _round_up(max(sub, min(tm, M)), sub)
    if M > sub:
        tm = min(tm, _round_up(pl.cdiv(M, 2), sub))

    def vmem_need(tm_):
        return (2 * tm_ * Dp * in_bytes        # cond tiles (double-buffered)
                + 2 * tm_ * tn * in_bytes      # feature tiles (double-buffered)
                + 2 * tm_ * tn * out_bytes     # output tiles (double-buffered)
                + 2 * 2 * Dp * tn * w_bytes    # weight block (conservative 2x)
                + 2 * 2 * tn * 4               # bias block
                + 2 * tm_ * tn * 4             # gamma / beta f32 intermediates
                + tm_ * Dp * 4)                # in-kernel lhs cast scratch (worst case)

    while vmem_need(tm) + headroom > ceiling and tm > sub:
        tm = max(sub, _round_up(tm // 2, sub))

    vmem_limit = int(min(ceiling, max(vmem_need(tm) + headroom, 32 * 1024 * 1024)))

    grid = (pl.cdiv(M, tm), pl.cdiv(Dp, tn))

    cost = pl.CostEstimate(
        flops=2 * M * Dp * (2 * Dp) + 3 * M * Dp,
        transcendentals=0,
        bytes_accessed=(2 * M * Dp * in_bytes + M * Dp * out_bytes
                        + 2 * Dp * Dp * w_bytes + 2 * Dp * 4),
    )

    def build(weight_buffered):
        wkw = {"pipeline_mode": pl.Buffered(1)} if weight_buffered else {}
        return pl.pallas_call(
            _film_kernel,
            out_shape=jax.ShapeDtypeStruct((M, Dp), out_dtype),
            grid_spec=pltpu.PrefetchScalarGridSpec(
                num_scalar_prefetch=0,
                grid=grid,
                in_specs=[
                    pl.BlockSpec((tm, Dp), lambda i, j: (i, 0)),    # cond rows (resident over j)
                    pl.BlockSpec((tm, tn), lambda i, j: (i, j)),    # feature tile
                    pl.BlockSpec((2, Dp, tn), lambda i, j: (0, 0, j), **wkw),  # [Wg^T|Wb^T] cols
                    pl.BlockSpec((2, 1, tn), lambda i, j: (0, 0, j), **wkw),   # [bg|bb] cols
                ],
                out_specs=pl.BlockSpec((tm, tn), lambda i, j: (i, j)),
            ),
            compiler_params=pltpu.CompilerParams(
                dimension_semantics=("parallel", "arbitrary"),   # rows shard across TCs
                vmem_limit_bytes=vmem_limit,
            ),
            cost_estimate=cost,
        )

    try:
        out2d = build(True)(cond2d, feat2d, w_stacked, b_stacked)
    except Exception:
        # Installed Pallas rejects single-buffer pipeline_mode: use default buffering.
        out2d = build(False)(cond2d, feat2d, w_stacked, b_stacked)

    if Dp != D:
        out2d = out2d[:, :D]
    return out2d.reshape(B, S, D)


def film_reference(features, cond, w_gamma, b_gamma, w_beta, b_beta):
    # PyTorch nn.Linear semantics: x @ W^T + b, with W in (out_features, in_features).
    gamma = cond @ w_gamma.T + b_gamma
    beta = cond @ w_beta.T + b_beta
    return gamma * features + beta


if __name__ == "__main__":
    B, S, D = 2, 8, 32
    key = jax.random.PRNGKey(0)
    k_feat, k_cond, k_wg, k_bg, k_wb, k_bb = jax.random.split(key, 6)

    features = jax.random.normal(k_feat, (B, S, D), dtype=jnp.float32)
    cond = jax.random.normal(k_cond, (B, S, D), dtype=jnp.float32)

    # Deterministic "nn.Linear(dim, dim)" parameters, PyTorch layout (out, in).
    bound = 1.0 / jnp.sqrt(jnp.float32(D))
    w_gamma = jax.random.uniform(k_wg, (D, D), jnp.float32, -bound, bound)
    b_gamma = jax.random.uniform(k_bg, (D,), jnp.float32, -bound, bound)
    w_beta = jax.random.uniform(k_wb, (D, D), jnp.float32, -bound, bound)
    b_beta = jax.random.uniform(k_bb, (D,), jnp.float32, -bound, bound)

    ref = film_reference(features, cond, w_gamma, b_gamma, w_beta, b_beta)

    # f32 path (exact vs reference).
    w_st, b_st = film_prepare_params(w_gamma, b_gamma, w_beta, b_beta)
    out = jax.block_until_ready(film_layer(features, cond, w_st, b_st))
    assert out.shape == (B, S, D)
    assert jnp.allclose(out, ref, atol=1e-5, rtol=1e-5), "f32 path mismatch vs reference"

    # bf16 weight path (in-kernel LHS cast, f32 accumulation) — loose tolerance.
    w_bf, b_bf = film_prepare_params(w_gamma, b_gamma, w_beta, b_beta,
                                     param_dtype=jnp.bfloat16)
    out_bf = jax.block_until_ready(film_layer(features, cond, w_bf, b_bf))
    assert jnp.allclose(out_bf, ref, atol=1e-1, rtol=1e-1), "bf16 path mismatch vs reference"

    print("KERNEL_OK")
</pallas_src>

<mosaic_0001>
module attributes {stable_mosaic.version = 11 : i64} {
  func.func @_film_kernel(%arg0: i32, %arg1: i32, %arg2: memref<8x128xf32, #tpu.memory_space<vmem>>, %arg3: memref<8x128xf32, #tpu.memory_space<vmem>>, %arg4: memref<2x128x128xf32, #tpu.memory_space<vmem>>, %arg5: memref<2x1x128xf32, #tpu.memory_space<vmem>>, %arg6: memref<8x128xf32, #tpu.memory_space<vmem>>) attributes {dimension_semantics = [#tpu.dimension_semantics<parallel>, #tpu.dimension_semantics<arbitrary>], iteration_bounds = array<i64: 2, 1>, scalar_prefetch = 0 : i64, scratch_operands = 0 : i64, tpu.core_type = #tpu.core_type<tc>, window_params = [{transform_indices = @transform_0, window_bounds = array<i64: 8, 128>}, {transform_indices = @transform_1, window_bounds = array<i64: 8, 128>}, {pipeline_mode = #tpu.pipeline_mode<synchronous>, transform_indices = @transform_2, window_bounds = array<i64: 2, 128, 128>}, {pipeline_mode = #tpu.pipeline_mode<synchronous>, transform_indices = @transform_3, window_bounds = array<i64: 2, 1, 128>}, {transform_indices = @transform_4, window_bounds = array<i64: 8, 128>}]} {
    %c0 = arith.constant 0 : index
    %c0_0 = arith.constant 0 : index
    %0 = vector.load %arg2[%c0, %c0_0] : memref<8x128xf32, #tpu.memory_space<vmem>>, vector<8x128xf32>
    %c0_1 = arith.constant 0 : index
    %c0_2 = arith.constant 0 : index
    %c0_3 = arith.constant 0 : index
    %1 = vector.load %arg4[%c0_1, %c0_2, %c0_3] : memref<2x128x128xf32, #tpu.memory_space<vmem>>, vector<1x128x128xf32>
    %2 = vector.shape_cast %1 : vector<1x128x128xf32> to vector<128x128xf32>
    %cst = arith.constant dense<0.000000e+00> : vector<8x128xf32>
    %3 = tpu.matmul %0, %2, %cst {dimension_numbers = #tpu.dot_dimension_numbers<[1], [0], [0], [1], [0, 0, 1, 1], [], []>} : vector<8x128xf32>, vector<128x128xf32>, vector<8x128xf32> -> vector<8x128xf32>
    %c0_4 = arith.constant 0 : index
    %c0_5 = arith.constant 0 : index
    %c0_6 = arith.constant 0 : index
    %4 = vector.load %arg5[%c0_4, %c0_5, %c0_6] : memref<2x1x128xf32, #tpu.memory_space<vmem>>, vector<1x1x128xf32>
    %5 = vector.shape_cast %4 : vector<1x1x128xf32> to vector<1x128xf32>
    %6 = vector.broadcast %5 : vector<1x128xf32> to vector<8x128xf32>
    %7 = arith.addf %3, %6 : vector<8x128xf32>
    %c1 = arith.constant 1 : index
    %c0_7 = arith.constant 0 : index
    %c0_8 = arith.constant 0 : index
    %8 = vector.load %arg4[%c1, %c0_7, %c0_8] : memref<2x128x128xf32, #tpu.memory_space<vmem>>, vector<1x128x128xf32>
    %9 = vector.shape_cast %8 : vector<1x128x128xf32> to vector<128x128xf32>
    %cst_9 = arith.constant dense<0.000000e+00> : vector<8x128xf32>
    %10 = tpu.matmul %0, %9, %cst_9 {dimension_numbers = #tpu.dot_dimension_numbers<[1], [0], [0], [1], [0, 0, 1, 1], [], []>} : vector<8x128xf32>, vector<128x128xf32>, vector<8x128xf32> -> vector<8x128xf32>
    %c1_10 = arith.constant 1 : index
    %c0_11 = arith.constant 0 : index
    %c0_12 = arith.constant 0 : index
    %11 = vector.load %arg5[%c1_10, %c0_11, %c0_12] : memref<2x1x128xf32, #tpu.memory_space<vmem>>, vector<1x1x128xf32>
    %12 = vector.shape_cast %11 : vector<1x1x128xf32> to vector<1x128xf32>
    %13 = vector.broadcast %12 : vector<1x128xf32> to vector<8x128xf32>
    %14 = arith.addf %10, %13 : vector<8x128xf32>
    %c0_13 = arith.constant 0 : index
    %c0_14 = arith.constant 0 : index
    %15 = vector.load %arg3[%c0_13, %c0_14] : memref<8x128xf32, #tpu.memory_space<vmem>>, vector<8x128xf32>
    %16 = arith.mulf %7, %15 : vector<8x128xf32>
    %17 = arith.addf %16, %14 : vector<8x128xf32>
    %c0_15 = arith.constant 0 : index
    %c0_16 = arith.constant 0 : index
    %18 = vector.load %arg6[%c0_15, %c0_16] : memref<8x128xf32, #tpu.memory_space<vmem>>, vector<8x128xf32>
    tpu.vector_store %arg6[%c0_15, %c0_16], %17 {strides = array<i32>} : memref<8x128xf32, #tpu.memory_space<vmem>>, vector<8x128xf32>,
    return
  }
  func.func @transform_0(%arg0: i32, %arg1: i32) -> (i32, i32) {
    %c0_i32 = arith.constant 0 : i32
    %c0_i32_0 = arith.constant 0 : i32
    return %arg0, %c0_i32 : i32, i32
  }
  func.func @transform_1(%arg0: i32, %arg1: i32) -> (i32, i32) {
    %c0_i32 = arith.constant 0 : i32
    return %arg0, %arg1 : i32, i32
  }
  func.func @transform_2(%arg0: i32, %arg1: i32) -> (i32, i32, i32) {
    %c0_i32 = arith.constant 0 : i32
    %c0_i32_0 = arith.constant 0 : i32
    %c0_i32_1 = arith.constant 0 : i32
    return %c0_i32, %c0_i32_0, %arg1 : i32, i32, i32
  }
  func.func @transform_3(%arg0: i32, %arg1: i32) -> (i32, i32, i32) {
    %c0_i32 = arith.constant 0 : i32
    %c0_i32_0 = arith.constant 0 : i32
    %c0_i32_1 = arith.constant 0 : i32
    return %c0_i32, %c0_i32_0, %arg1 : i32, i32, i32
  }
  func.func @transform_4(%arg0: i32, %arg1: i32) -> (i32, i32) {
    %c0_i32 = arith.constant 0 : i32
    return %arg0, %arg1 : i32, i32
  }
}

module attributes {stable_mosaic.version = 11 : i64} {
  func.func @_film_kernel(%arg0: i32, %arg1: i32, %arg2: memref<8x128xf32, #tpu.memory_space<vmem>>, %arg3: memref<8x128xf32, #tpu.memory_space<vmem>>, %arg4: memref<2x128x128xf32, #tpu.memory_space<vmem>>, %arg5: memref<2x1x128xf32, #tpu.memory_space<vmem>>, %arg6: memref<8x128xf32, #tpu.memory_space<vmem>>) attributes {dimension_semantics = [#tpu.dimension_semantics<parallel>, #tpu.dimension_semantics<arbitrary>], iteration_bounds = array<i64: 2, 1>, scalar_prefetch = 0 : i64, scratch_operands = 0 : i64, tpu.core_type = #tpu.core_type<tc>, window_params = [{transform_indices = @transform_0, window_bounds = array<i64: 8, 128>}, {transform_indices = @transform_1, window_bounds = array<i64: 8, 128>}, {transform_indices = @transform_2, window_bounds = array<i64: 2, 128, 128>}, {transform_indices = @transform_3, window_bounds = array<i64: 2, 1, 128>}, {transform_indices = @transform_4, window_bounds = array<i64: 8, 128>}]} {
    %c0 = arith.constant 0 : index
    %c0_0 = arith.constant 0 : index
    %0 = vector.load %arg2[%c0, %c0_0] : memref<8x128xf32, #tpu.memory_space<vmem>>, vector<8x128xf32>
    %c0_1 = arith.constant 0 : index
    %c0_2 = arith.constant 0 : index
    %c0_3 = arith.constant 0 : index
    %1 = vector.load %arg4[%c0_1, %c0_2, %c0_3] : memref<2x128x128xf32, #tpu.memory_space<vmem>>, vector<1x128x128xf32>
    %2 = vector.shape_cast %1 : vector<1x128x128xf32> to vector<128x128xf32>
    %cst = arith.constant dense<0.000000e+00> : vector<8x128xf32>
    %3 = tpu.matmul %0, %2, %cst {dimension_numbers = #tpu.dot_dimension_numbers<[1], [0], [0], [1], [0, 0, 1, 1], [], []>} : vector<8x128xf32>, vector<128x128xf32>, vector<8x128xf32> -> vector<8x128xf32>
    %c0_4 = arith.constant 0 : index
    %c0_5 = arith.constant 0 : index
    %c0_6 = arith.constant 0 : index
    %4 = vector.load %arg5[%c0_4, %c0_5, %c0_6] : memref<2x1x128xf32, #tpu.memory_space<vmem>>, vector<1x1x128xf32>
    %5 = vector.shape_cast %4 : vector<1x1x128xf32> to vector<1x128xf32>
    %6 = vector.broadcast %5 : vector<1x128xf32> to vector<8x128xf32>
    %7 = arith.addf %3, %6 : vector<8x128xf32>
    %c1 = arith.constant 1 : index
    %c0_7 = arith.constant 0 : index
    %c0_8 = arith.constant 0 : index
    %8 = vector.load %arg4[%c1, %c0_7, %c0_8] : memref<2x128x128xf32, #tpu.memory_space<vmem>>, vector<1x128x128xf32>
    %9 = vector.shape_cast %8 : vector<1x128x128xf32> to vector<128x128xf32>
    %cst_9 = arith.constant dense<0.000000e+00> : vector<8x128xf32>
    %10 = tpu.matmul %0, %9, %cst_9 {dimension_numbers = #tpu.dot_dimension_numbers<[1], [0], [0], [1], [0, 0, 1, 1], [], []>} : vector<8x128xf32>, vector<128x128xf32>, vector<8x128xf32> -> vector<8x128xf32>
    %c1_10 = arith.constant 1 : index
    %c0_11 = arith.constant 0 : index
    %c0_12 = arith.constant 0 : index
    %11 = vector.load %arg5[%c1_10, %c0_11, %c0_12] : memref<2x1x128xf32, #tpu.memory_space<vmem>>, vector<1x1x128xf32>
    %12 = vector.shape_cast %11 : vector<1x1x128xf32> to vector<1x128xf32>
    %13 = vector.broadcast %12 : vector<1x128xf32> to vector<8x128xf32>
    %14 = arith.addf %10, %13 : vector<8x128xf32>
    %c0_13 = arith.constant 0 : index
    %c0_14 = arith.constant 0 : index
    %15 = vector.load %arg3[%c0_13, %c0_14] : memref<8x128xf32, #tpu.memory_space<vmem>>, vector<8x128xf32>
    %16 = arith.mulf %7, %15 : vector<8x128xf32>
    %17 = arith.addf %16, %14 : vector<8x128xf32>
    %c0_15 = arith.constant 0 : index
    %c0_16 = arith.constant 0 : index
    %18 = vector.load %arg6[%c0_15, %c0_16] : memref<8x128xf32, #tpu.memory_space<vmem>>, vector<8x128xf32>
    tpu.vector_store %arg6[%c0_15, %c0_16], %17 {strides = array<i32>} : memref<8x128xf32, #tpu.memory_space<vmem>>, vector<8x128xf32>,
    return
  }
  func.func @transform_0(%arg0: i32, %arg1: i32) -> (i32, i32) {
    %c0_i32 = arith.constant 0 : i32
    %c0_i32_0 = arith.constant 0 : i32
    return %arg0, %c0_i32 : i32, i32
  }
  func.func @transform_1(%arg0: i32, %arg1: i32) -> (i32, i32) {
    %c0_i32 = arith.constant 0 : i32
    return %arg0, %arg1 : i32, i32
  }
  func.func @transform_2(%arg0: i32, %arg1: i32) -> (i32, i32, i32) {
    %c0_i32 = arith.constant 0 : i32
    %c0_i32_0 = arith.constant 0 : i32
    %c0_i32_1 = arith.constant 0 : i32
    return %c0_i32, %c0_i32_0, %arg1 : i32, i32, i32
  }
  func.func @transform_3(%arg0: i32, %arg1: i32) -> (i32, i32, i32) {
    %c0_i32 = arith.constant 0 : i32
    %c0_i32_0 = arith.constant 0 : i32
    %c0_i32_1 = arith.constant 0 : i32
    return %c0_i32, %c0_i32_0, %arg1 : i32, i32, i32
  }
  func.func @transform_4(%arg0: i32, %arg1: i32) -> (i32, i32) {
    %c0_i32 = arith.constant 0 : i32
    return %arg0, %arg1 : i32, i32
  }
}

</mosaic_0001>

<bundles_post_ra>
// kernel: tpu_custom_call.1
= control target key start
LH: loop header
LB: loop body
LE: loop exit
PB: predicated region body
PF: predicated region fallthrough
CT: control target
= control target key end

     0   :  { %s1384_s0 = inlined_call_operand.hbm [shape: f32[16,128], index: 0, kind: input, shape index: {}]   ;;  %s1385_s1 = inlined_call_operand.hbm [shape: f32[16,128], index: 1, kind: input, shape index: {}]   ;;  %s1386_s2 = inlined_call_operand.hbm [shape: f32[2,128,128], index: 2, kind: input, shape index: {}]   ;;  %s1387_s3 = inlined_call_operand.vmem [shape: f32[2,1,128], index: 3, kind: input, shape index: {}]   ;;  %s1388_s4 = inlined_call_operand.hbm [shape: f32[16,128], index: 4, kind: output, shape index: {}]  }
   0x1   :  { %1395 = sst [smem:[#allocation15_spill]] %s1386_s2 }
   0x2   :  { %9 = vsyncpa [#allocation3], 0 }
   0x3   :  { %11 = vsyncpa [#allocation3 + $0x1], 0 }
   0x4   :  { %12 = vsyncpa [#allocation6], 0 }
   0x5   :  { %14 = vsyncpa [#allocation6 + $0x1], 0 }
   0x6   :  { %15 = vsyncpa [#allocation4], 0 }
   0x7   :  { %17 = vsyncpa [#allocation4 + $0x1], 0  ;;  %s1107_s15 = smov 0   ;;  %s1109_s16 = smov 0  }
   0x8   :  { %s1111_s17 = smov 0   ;;  %s1113_s18 = smov 0  }
   0x9   :  { %s1115_s19 = smov 0   ;;  %s1117_s20 = smov 0  }
   0xa LB: > { %1396 = sst [smem:[#allocation13_spill]] %s1067_s19  ;;  %s1138_s21 = sadd.s32 4294967295, %s1071_s20   ;;  %s1071_s20 = sphi %s1117_s20, %s23_s20   ;;  %s1067_s19 = sphi %s1115_s19, %s1415_s19   ;;  %s1063_s18 = sphi %s1113_s18, %s1414_s18   ;;  %s1059_s17 = sphi %s1111_s17, %s1418_s17   ;;  %s1055_s16 = sphi %s1109_s16, %s1417_s16   ;;  %s1051_s15 = sphi %s1107_s15, %s1416_s15  }
   0xb   : > { %s637_s22 = sadd.s32 4294967294, %s1071_s20   ;;  %p55_p0 = scmp.ne.s32.totalorder %s1055_s16, %s1051_s15 }
   0xc   : > { %p1389_p1 = scmp.eq.s32.totalorder %s1138_s21, 0  ;;  %p167_p3 = scmp.eq.s32.totalorder %s637_s22, 1 }
   0xd   : > { %p638_p5 = scmp.ge.s32.totalorder %s1071_s20, 1  ;;  %p174_p7 = scmp.lt.s32.totalorder %s1071_s20, 3 }
   0xe   : > { %p1147_p4 = por %p1389_p1, %p55_p0  ;;  %p1152_p6 = por %p167_p3, %p55_p0 }
   0xf   : > { %p1157_p8 = pnand %p638_p5, %p174_p7  ;;  %s1073_s26 = smov [#allocation7]  }
  0x10   : > { %s1397_s23 = scalar_select %p1147_p4, 1, 0 }
  0x11   : > { %s1398_s24 = scalar_select %p1152_p6, 1, 0 }
  0x12   : > { %s1399_s25 = scalar_select %p1157_p8, 1, 0 }
  0x13   : > { %s188_s27 = sshll.u32 %s1073_s26, 4  ;;  %p820_p9 = pneg %p1157_p8  ;;  %s189_s27 = int_to_ptr.vmem [resolvable:$true] %s188_s27 }
  0x14   : > { %s35_s29 = sadd.s32 1, %s1067_s19  ;;  %s1401_s2 = sld [smem:[#allocation15_spill]] }
  0x15   : > { %p1166_p11 = pnand %p820_p9, %p1389_p1 }
  0x17   : > { %p895_p13 = pneg %p1166_p11 }
  0x1a   : > { %s893_s6 = scalar_lea.hbm %s1401_s2, 4096 }
  0x1b   : > { %p894_p12 = scmp.ne.s32.totalorder %s1401_s2, %s893_s6  ;;  %p900_p5 = scmp.lt.u32.totalorder %s893_s6, %s1401_s2 }
  0x1d   : > { %p896_p0 = pnand %p895_p13, %p894_p12 }
  0x1f   : > { %p897_p3 = pneg %p896_p0 }
  0x21   : > { %p902_p7 = pnand %p900_p5, %p897_p3 }
  0x23   : > { %905 = shalt.err (!%p902_p7)
}
  0x24   : > { %s906_s11 = scalar_lea.vmem %s189_s27, 4096  ;;  %p914_p2 = scmp.lt.s32.totalorder %s189_s27, %s189_s27 }
  0x25   : > { %p907_p9 = scmp.ne.s32.totalorder %s189_s27, %s906_s11  ;;  %p915_p6 = scmp.lt.s32.totalorder %s906_s11, %s906_s11 }
  0x27   : > { %p909_p10 = pnand %p907_p9, %p895_p13  ;;  %p916_p4 = por %p915_p6, %p914_p2 }
  0x29   : > { %p910_p1 = pneg %p909_p10 }
  0x2b   : > { %p917_p8 = pnand %p916_p4, %p910_p1 }
  0x2d   : > { %920 = shalt.err (!%p917_p8)
}
  0x2e   : > { %s1074_s12 = smov 128   ;;  %s1075_s13 = smov 8  }
  0x2f   : > { %823 = dma.hbm_to_vmem [thread:$0]  (!%p1166_p11), %s1401_s2, 4096, %s189_s27, [#allocation6], %s1074_s12, %s1074_s12, %s1075_s13  }
  0x30   : > { %p37_p1 = scmp.ge.s32.totalorder %s35_s29, 2  ;;  %s42_s26 = sadd.s32 1, %s1059_s17 }
  0x31   : > { %p49_p2 = scmp.ne.s32.totalorder %s1059_s17, %s1055_s16  ;;  %p50_p4 = scmp.eq.s32.totalorder %s1071_s20, 0 }
  0x32   : > { %s1420_s29 = smov (%p37_p1, %s35_s29), 0  ;;  %p1404_p8 = scmp.eq.s32.totalorder %s1138_s21, 1 }
  0x33   : > { %1402 = sst [smem:[#allocation14_spill]] %s1420_s29  ;;  %p1193_p6 = por %p50_p4, %p49_p2 }
  0x34   : > { %p1199_p10 = por %p1404_p8, %p49_p2  ;;  %s39_s5 = ssub.s32 %s1067_s19, %s1420_s29 }
  0x35   : > { %p836_p11 = scmp.lt.s32.totalorder %s1071_s20, 2  ;;  %p40_p12 = scmp.eq.s32.totalorder %s39_s5, 0 }
  0x36   : > { %s1405_s28 = scalar_select %p1199_p10, 1, 0 }
  0x37   : > { %s208_s27 = sand.u32 1, %s1059_s17   ;;  %s643_s8 = sshll.u32 %s1067_s19, 7 }
  0x38   : > { %s1207_s6 = sshll.u32 %s208_s27, 3  ;;  %s1216_s11 = scalar_lea.hbm %s1384_s0, %s643_s8 }
  0x39   : > { %s1210_s7 = scalar_select %p40_p12, %s1059_s17, %s42_s26  }
  0x3a   : > { %s212_s12 = scalar_lea.vmem [#allocation2], %s1207_s6  ;;  %p1223_p13 = pnand %p836_p11, %p1193_p6 }
  0x3b   : > { %s219_s13 = sshll.u32 %s212_s12, 4  ;;  %s1230_s5 = scalar_lea.hbm %s1385_s1, %s643_s8  ;;  %s1219_s13 = int_to_ptr.vmem [resolvable:$true] %s219_s13 }
  0x3c   : > { %s226_s9 = sand.u32 1, %s1071_s20   ;;  %s209_s10 = scalar_lea.sflag [#allocation3], %s208_s27 }
  0x3d   : > { %s921_s2 = scalar_lea.hbm %s1216_s11, 128  ;;  %p923_p3 = pneg %p1223_p13 }
  0x3e   : > { %p922_p0 = scmp.ne.s32.totalorder %s1216_s11, %s921_s2  ;;  %s926_s29 = scalar_lea.hbm %s1384_s0, 256 }
  0x3f   : > { %p927_p9 = scmp.lt.u32.totalorder %s1216_s11, %s1384_s0  ;;  %p928_p1 = scmp.lt.u32.totalorder %s926_s29, %s921_s2 }
  0x40   : > { %p924_p5 = pnand %p923_p3, %p922_p0  ;;  %p930_p4 = scmp.lt.u32.totalorder %s921_s2, %s1216_s11 }
  0x41   : > { %p929_p2 = por %p928_p1, %p927_p9 }
  0x42   : > { %p925_p7 = pneg %p924_p5 }
  0x43   : > { %p931_p6 = por %p930_p4, %p929_p2 }
  0x45   : > { %p932_p8 = pnand %p931_p6, %p925_p7 }
  0x47   : > { %935 = shalt.err (!%p932_p8)
}
  0x48   : > { %s936_s27 = scalar_lea.vmem %s1219_s13, 128  ;;  %s1076_s8 = smov [#allocation2]  }
  0x49   : > { %p937_p11 = scmp.ne.s32.totalorder %s1219_s13, %s936_s27  ;;  %s941_s26 = sshll.u32 %s1076_s8, 4  ;;  %s942_s26 = int_to_ptr.vmem [resolvable:$false] %s941_s26 }
  0x4a   : > { %s943_s19 = scalar_lea.vmem %s942_s26, 256  ;;  %p944_p5 = scmp.lt.s32.totalorder %s1219_s13, %s942_s26 }
  0x4b   : > { %p939_p12 = pnand %p937_p11, %p923_p3  ;;  %p945_p9 = scmp.lt.s32.totalorder %s943_s19, %s936_s27 }
  0x4d   : > { %p940_p0 = pneg %p939_p12  ;;  %p946_p1 = por %p945_p9, %p944_p5 }
  0x4f   : > { %p947_p2 = pnand %p946_p1, %p940_p0 }
  0x51   : > { %950 = shalt.err (!%p947_p2)
}
  0x52   : > { %827 = dma.hbm_to_vmem [thread:$0]  (!%p1223_p13), %s1216_s11, 128, %s1219_s13, %s209_s10  }
  0x53   : > { %s230_s2 = scalar_lea.vmem [#allocation5], %s1207_s6  ;;  %s227_s30 = scalar_lea.sflag [#allocation6], %s226_s9 }
  0x54   : > { %s238_s29 = sshll.u32 %s230_s2, 4  ;;  %s951_s12 = scalar_lea.hbm %s1230_s5, 128  ;;  %s239_s29 = int_to_ptr.vmem [resolvable:$true] %s238_s29 }
  0x55   : > { %p952_p7 = scmp.ne.s32.totalorder %s1230_s5, %s951_s12  ;;  %s956_s8 = scalar_lea.hbm %s1385_s1, 256 }
  0x56   : > { %p957_p8 = scmp.lt.u32.totalorder %s1230_s5, %s1385_s1  ;;  %p958_p11 = scmp.lt.u32.totalorder %s956_s8, %s951_s12 }
  0x57   : > { %p954_p4 = pnand %p952_p7, %p923_p3  ;;  %p960_p0 = scmp.lt.u32.totalorder %s951_s12, %s1230_s5 }
  0x58   : > { %p959_p12 = por %p958_p11, %p957_p8 }
  0x59   : > { %p955_p6 = pneg %p954_p4 }
  0x5a   : > { %p961_p5 = por %p960_p0, %p959_p12 }
  0x5c   : > { %p962_p9 = pnand %p961_p5, %p955_p6 }
  0x5e   : > { %965 = shalt.err (!%p962_p9)
}
  0x5f   : > { %s966_s6 = scalar_lea.vmem %s239_s29, 128  ;;  %s1077_s11 = smov [#allocation5]  }
  0x60   : > { %p967_p1 = scmp.ne.s32.totalorder %s239_s29, %s966_s6  ;;  %s971_s13 = sshll.u32 %s1077_s11, 4  ;;  %s972_s13 = int_to_ptr.vmem [resolvable:$false] %s971_s13 }
  0x61   : > { %s973_s9 = scalar_lea.vmem %s972_s13, 256  ;;  %p974_p4 = scmp.lt.s32.totalorder %s239_s29, %s972_s13 }
  0x62   : > { %p969_p2 = pnand %p967_p1, %p923_p3  ;;  %p975_p10 = scmp.lt.s32.totalorder %s973_s9, %s966_s6 }
  0x64   : > { %p970_p7 = pneg %p969_p2  ;;  %p976_p8 = por %p975_p10, %p974_p4 }
  0x66   : > { %p977_p11 = pnand %p976_p8, %p970_p7 }
  0x68   : > { %980 = shalt.err (!%p977_p11)
}
  0x69   : > { %830 = dma.hbm_to_vmem [thread:$0]  (!%p1223_p13), %s1230_s5, 128, %s239_s29, %s227_s30  }
  0x6a   : > { %p1407_p6 = scmp.ne.s32.totalorder %s1399_s25, 0 }
  0x6b   : > { %s1283_s10 = sand.u32 (!%p1407_p6), 1, %s1055_s16   ;;  %p1408_p10 = scmp.ne.s32.totalorder (!%p1407_p6), %s1397_s23, 0 }
  0x6c   : > { %247 = sbr.rel (%p1407_p6) target bundleno = 388 (0x184), region = 36  ;;  %s1286_s2 = sshll.u32 (!%p1407_p6), %s1283_s10, 3 }
  0x6d   : > { %s250_s12 = scalar_lea.sflag (!%p1407_p6), [#allocation3], %s1283_s10  ;;  %s253_s22 = scalar_lea.vmem (!%p1407_p6), [#allocation2], %s1286_s2 }
  0x73   : > { %1034 = dma.done.wait (%p1408_p10), %s250_s12, 128  }
  0x74   : > { %1036 = vsyncadd (%p1408_p10), %s250_s12, 4294967168  ;;  %s258_s25 = sand.u32 1, %s1138_s21   ;;  %s262_s5 = scalar_lea.vmem [#allocation5], %s1286_s2 }
  0x75   : > { %s259_s14 = scalar_lea.sflag [#allocation6], %s258_s25 }
  0x76   : > { %1038 = dma.done.wait (%p1408_p10), %s259_s14, 128  }
  0x77   : > { %1040 = vsyncadd (%p1408_p10), %s259_s14, 4294967168  ;;  %p1409_p13 = scmp.eq.s32.totalorder %s1138_s21, 0 }
  0x79   : > { %1042 = dma.done.wait (%p1409_p13), [#allocation6], 4096   ;;  %p1410_p3 = pmov %p1409_p13 }
  0x7a   : > { %v1078_v0 = vmov 0.0|0.0   ;;  %vm1079_vm0 = vmmov 0   ;;  %v1080_v1 = vmov 0.0   ;;  %v303_v2 = vld [vmem:[#allocation7] sm:$0xff]  ;;  %v304_v3 = vld [vmem:[#allocation7 + $0x8] sm:$0xff]  ;;  %v305_v7 = vld [vmem:[#allocation7 + $0x10] sm:$0xff] }
  0x7b   : > { %1044 = vsyncadd (%p1410_p3), [#allocation6], 4294963200  ;;  %762 = vmatprep.subr.bf16.mxu0 %v1078_v0  ;;  %786 = vmatprep.subr.bf16.mxu1 %v1078_v0  ;;  %v397_v4 = vld [vmem:[#allocation7 + $0x80] sm:$0xff]  ;;  %v763_v5 = vpack.c.bf16 %v304_v3, %v303_v2  ;;  %v398_v6 = vld [vmem:[#allocation7 + $0x88] sm:$0xff]  ;;  %s655_s27 = sshll.u32 %s1063_s18, 7  ;;  %s298_s8 = scalar_lea.vmem [#allocation8], %s1286_s2 }
  0x7c   : > { %724 = vmatprep.mubr.msk.f32.mxu0 %vm1079_vm0, %v1080_v1  ;;  %759 = vmatprep.mubr.msk.f32.mxu1 %vm1079_vm0, %v1080_v1  ;;  %v306_v8 = vld [vmem:[#allocation7 + $0x18] sm:$0xff]  ;;  %v787_v9 = vpack.c.bf16 %v398_v6, %v397_v4  ;;  %v399_v10 = vld [vmem:[#allocation7 + $0x90] sm:$0xff]  ;;  %v307_v14 = vld [vmem:[#allocation7 + $0x20] sm:$0xff]  ;;  %s510_s26 = sshll.u32 %s298_s8, 4  ;;  %s1335_s11 = scalar_lea.hbm %s1388_s4, %s655_s27  ;;  %s1337_s26 = int_to_ptr.vmem [resolvable:$true] %s510_s26 }
  0x7d   : > { %v400_v11 = vld [vmem:[#allocation7 + $0x98] sm:$0xff]  ;;  %764 = vmatpush3.bf16.msra.mxu0 %v763_v5  ;;  %v766_v12 = vpack.c.bf16 %v306_v8, %v305_v7  ;;  %v308_v15 = vld [vmem:[#allocation7 + $0x28] sm:$0xff]  ;;  %v401_v16 = vld [vmem:[#allocation7 + $0xa0] sm:$0xff]  ;;  %s496_s13 = scalar_lea.sflag [#allocation4], %s1283_s10  ;;  %s981_s9 = scalar_lea.vmem %s1337_s26, 128 }
  0x7e   : > { %788 = vmatpush3.bf16.msra.mxu1 %v787_v9  ;;  %765 = vmatprep.subr.bf16.mxu0 %v1078_v0  ;;  %v790_v13 = vpack.c.bf16 %v400_v11, %v399_v10  ;;  %v402_v17 = vld [vmem:[#allocation7 + $0xa8] sm:$0xff]  ;;  %v769_v18 = vpack.c.bf16 %v308_v15, %v307_v14  ;;  %v309_v20 = vld [vmem:[#allocation7 + $0x30] sm:$0xff]  ;;  %v310_v21 = vld [vmem:[#allocation7 + $0x38] sm:$0xff]  ;;  %p982_p12 = scmp.ne.s32.totalorder %s1337_s26, %s981_s9  ;;  %p1411_p0 = scmp.ne.s32.totalorder %s1405_s28, 0 }
  0x7f   : > { %789 = vmatprep.subr.bf16.mxu1 %v1078_v0  ;;  %v793_v19 = vpack.c.bf16 %v402_v17, %v401_v16  ;;  %v403_v22 = vld [vmem:[#allocation7 + $0xb0] sm:$0xff]  ;;  %v404_v23 = vld [vmem:[#allocation7 + $0xb8] sm:$0xff]  ;;  %v772_v24 = vpack.c.bf16 %v310_v21, %v309_v20  ;;  %v311_v26 = vld [vmem:[#allocation7 + $0x40] sm:$0xff]  ;;  %s1081_s18 = smov [#allocation8]  }
  0x80   : > { %v796_v25 = vpack.c.bf16 %v404_v23, %v403_v22  ;;  %v312_v27 = vld [vmem:[#allocation7 + $0x48] sm:$0xff]  ;;  %v405_v28 = vld [vmem:[#allocation7 + $0xc0] sm:$0xff]  ;;  %v313_v32 = vld [vmem:[#allocation7 + $0x50] sm:$0xff]  ;;  %p983_p5 = pnand %p982_p12, %p1411_p0  ;;  %s985_s2 = sshll.u32 %s1081_s18, 4  ;;  %s986_s2 = int_to_ptr.vmem [resolvable:$false] %s985_s2 }
  0x81   : > { %767 = vmatpush3.bf16.msra.mxu0 %v766_v12  ;;  %v406_v29 = vld [vmem:[#allocation7 + $0xc8] sm:$0xff]  ;;  %v775_v30 = vpack.c.bf16 %v312_v27, %v311_v26  ;;  %v314_v33 = vld [vmem:[#allocation7 + $0x58] sm:$0xff]  ;;  %v407_v34 = vld [vmem:[#allocation7 + $0xd0] sm:$0xff]  ;;  %s987_s12 = scalar_lea.vmem %s986_s2, 256  ;;  %p988_p1 = scmp.lt.s32.totalorder %s1337_s26, %s986_s2 }
  0x82   : > { %791 = vmatpush3.bf16.msra.mxu1 %v790_v13  ;;  %768 = vmatprep.subr.bf16.mxu0 %v1078_v0  ;;  %v799_v31 = vpack.c.bf16 %v406_v29, %v405_v28  ;;  %v408_v35 = vld [vmem:[#allocation7 + $0xd8] sm:$0xff]  ;;  %v778_v36 = vpack.c.bf16 %v314_v33, %v313_v32  ;;  %v315_v38 = vld [vmem:[#allocation7 + $0x60] sm:$0xff]  ;;  %v316_v39 = vld [vmem:[#allocation7 + $0x68] sm:$0xff]  ;;  %p984_p9 = pneg %p983_p5  ;;  %p989_p2 = scmp.lt.s32.totalorder %s987_s12, %s981_s9 }
  0x83   : > { %792 = vmatprep.subr.bf16.mxu1 %v1078_v0  ;;  %v802_v37 = vpack.c.bf16 %v408_v35, %v407_v34  ;;  %v409_v40 = vld [vmem:[#allocation7 + $0xe0] sm:$0xff]  ;;  %v410_v41 = vld [vmem:[#allocation7 + $0xe8] sm:$0xff]  ;;  %v781_v42 = vpack.c.bf16 %v316_v39, %v315_v38  ;;  %v317_v44 = vld [vmem:[#allocation7 + $0x70] sm:$0xff] }
  0x84   : > { %v805_v43 = vpack.c.bf16 %v410_v41, %v409_v40  ;;  %v318_v45 = vld [vmem:[#allocation7 + $0x78] sm:$0xff]  ;;  %v411_v46 = vld [vmem:[#allocation7 + $0xf0] sm:$0xff]  ;;  %v302_v50 = vld [vmem:[%s253_s22] sm:$0xff]  ;;  %p990_p7 = por %p989_p2, %p988_p1 }
  0x85   : > { %770 = vmatpush3.bf16.msra.mxu0 %v769_v18  ;;  %v412_v47 = vld [vmem:[#allocation7 + $0xf8] sm:$0xff]  ;;  %v784_v48 = vpack.c.bf16 %v318_v45, %v317_v44  ;;  %v651_v51 = vld [vmem:[%s1387_s3] ss:$0 sm:$0xff]  ;;  %v653_v52 = vld [vmem:[%s1387_s3 + $0x1] ss:$0 sm:$0xff] }
  0x86   : > { %794 = vmatpush3.bf16.msra.mxu1 %v793_v19  ;;  %771 = vmatprep.subr.bf16.mxu0 %v1078_v0  ;;  %v808_v49 = vpack.c.bf16 %v412_v47, %v411_v46  ;;  %v491_v54 = vld [vmem:[%s262_s5] sm:$0xff]  ;;  %p991_p4 = pnand %p990_p7, %p984_p9 }
  0x87   : > { %795 = vmatprep.subr.bf16.mxu1 %v1078_v0 }
  0x89   : > { %773 = vmatpush3.bf16.msra.mxu0 %v772_v24 }
  0x8a   : > { %797 = vmatpush3.bf16.msra.mxu1 %v796_v25  ;;  %774 = vmatprep.subr.bf16.mxu0 %v1078_v0 }
  0x8b   : > { %798 = vmatprep.subr.bf16.mxu1 %v1078_v0 }
  0x8d   : > { %776 = vmatpush3.bf16.msra.mxu0 %v775_v30 }
  0x8e   : > { %800 = vmatpush3.bf16.msra.mxu1 %v799_v31  ;;  %777 = vmatprep.subr.bf16.mxu0 %v1078_v0 }
  0x8f   : > { %801 = vmatprep.subr.bf16.mxu1 %v1078_v0 }
  0x91   : > { %779 = vmatpush3.bf16.msra.mxu0 %v778_v36 }
  0x92   : > { %803 = vmatpush3.bf16.msra.mxu1 %v802_v37  ;;  %780 = vmatprep.subr.bf16.mxu0 %v1078_v0 }
  0x93   : > { %804 = vmatprep.subr.bf16.mxu1 %v1078_v0 }
  0x95   : > { %782 = vmatpush3.bf16.msra.mxu0 %v781_v42 }
  0x96   : > { %806 = vmatpush3.bf16.msra.mxu1 %v805_v43  ;;  %783 = vmatprep.subr.bf16.mxu0 %v1078_v0 }
  0x97   : > { %807 = vmatprep.subr.bf16.mxu1 %v1078_v0 }
  0x99   : > { %785 = vmatpush3.bf16.msra.mxu0 %v784_v48 }
  0x9a   : > { %809 = vmatpush3.bf16.msra.mxu1 %v808_v49 }
  0x9c   : > { %725 = vmatmul.mubr.f32.vlgmr.msra.gmra.mrb[0].mxu0 %v302_v50 }
  0x9d   : > { %760 = vmatmul.mubr.f32.vlgmr.msra.gmra.mrb[0].mxu1 %v302_v50 }
 0x16f   : > { %v392_v53 = vpop.f32.mrb[0].mxu0 }
 0x170   : > { %v393_v55 = vadd.f32 %v651_v51, %v392_v53  ;;  %v726_v56 = vpop.f32.mrb[1].mxu0  ;;  %v487_v57 = vpop.f32.mrb[0].mxu1 }
 0x171   : > { %v488_v58 = vadd.f32 %v653_v52, %v487_v57  ;;  %v761_v59 = vpop.f32.mrb[1].mxu1 }
 0x172   : > { %v492_v60 = vmul.f32 %v491_v54, %v393_v55 }
 0x174   : > { %v493_v61 = vadd.f32 %v492_v60, %v488_v58 }
 0x176   : > { %494 = vst [vmem:[%s298_s8] sm:$0xff] %v493_v61 }
 0x177   : > { %994 = shalt.err (!%p991_p4)
}
 0x178   : > { %s995_s10 = scalar_lea.hbm %s1335_s11, 128  ;;  %s999_s14 = scalar_lea.hbm %s1388_s4, 256 }
 0x179   : > { %p996_p8 = scmp.ne.s32.totalorder %s1335_s11, %s995_s10  ;;  %p1000_p10 = scmp.lt.u32.totalorder %s1335_s11, %s1388_s4 }
 0x17a   : > { %p1001_p13 = scmp.lt.u32.totalorder %s999_s14, %s995_s10  ;;  %p1003_p12 = scmp.lt.u32.totalorder %s995_s10, %s1335_s11 }
 0x17b   : > { %p997_p11 = pnand %p996_p8, %p1411_p0 }
 0x17c   : > { %p1002_p3 = por %p1001_p13, %p1000_p10 }
 0x17d   : > { %p998_p6 = pneg %p997_p11 }
 0x17e   : > { %p1004_p5 = por %p1003_p12, %p1002_p3 }
 0x180   : > { %p1005_p9 = pnand %p1004_p5, %p998_p6 }
 0x182   : > { %1008 = shalt.err (!%p1005_p9)
}
 0x183   : > { %818 = dma.vmem_to_hbm [thread:$0]  (%p1411_p0), %s1337_s26, 128, %s1335_s11, %s496_s13  }
 0x184 PF: > { %s522_s23 = sand.u32 1, %s1051_s15   ;;  %p1412_p1 = scmp.ne.s32.totalorder %s1398_s24, 0 }
 0x185   : > { %p1413_p2 = scmp.ge.s32.totalorder %s1071_s20, 2  ;;  %s523_s29 = scalar_lea.sflag [#allocation4], %s522_s23 }
 0x187   : > { %p832_p7 = pnand %p1413_p2, %p1412_p1 }
 0x189   : > { %1046 = dma.done.wait (!%p832_p7), %s523_s29, 128  }
 0x18a   : > { %1048 = vsyncadd (!%p832_p7), %s523_s29, 4294967168  ;;  %s23_s20 = sadd.s32 1, %s1071_s20   ;;  %s1414_s18 = sld [smem:[#allocation13_spill]] }
 0x18b   : > { %p20_p4 = scmp.ge.s32.totalorder %s23_s20, 4   ;;  %s1415_s19 = sld [smem:[#allocation14_spill]] }
 0x18c   : > { %s1416_s15 = smov %s1055_s16  ;;  %s1417_s16 = smov %s1059_s17 }
 0x18d   : > { %s1418_s17 = smov %s1210_s7  ;;  %22 = sbr.rel (!%p20_p4) target bundleno = 10 (0xa), region = 104 }
 0x194   :  { %528 = vsyncpa [#allocation3], 1 }
 0x195   :  { %530 = vsyncpa [#allocation3 + $0x1], 1 }
 0x196   :  { %531 = vsyncpa [#allocation6], 1 }
 0x197   :  { %533 = vsyncpa [#allocation6 + $0x1], 1 }
 0x198   :  { %534 = vsyncpa [#allocation4], 1 }
 0x199   :  { %536 = vsyncpa [#allocation4 + $0x1], 1 }

// kernel: tpu_custom_call.1
= control target key start
LH: loop header
LB: loop body
LE: loop exit
PB: predicated region body
PF: predicated region fallthrough
CT: control target
= control target key end

     0   :  { %s1384_s0 = inlined_call_operand.hbm [shape: f32[16,128], index: 0, kind: input, shape index: {}]   ;;  %s1385_s1 = inlined_call_operand.hbm [shape: f32[16,128], index: 1, kind: input, shape index: {}]   ;;  %s1386_s2 = inlined_call_operand.hbm [shape: f32[2,128,128], index: 2, kind: input, shape index: {}]   ;;  %s1387_s3 = inlined_call_operand.vmem [shape: f32[2,1,128], index: 3, kind: input, shape index: {}]   ;;  %s1388_s4 = inlined_call_operand.hbm [shape: f32[16,128], index: 4, kind: output, shape index: {}]  }
   0x1   :  { %1395 = sst [smem:[#allocation15_spill]] %s1386_s2 }
   0x2   :  { %9 = vsyncpa [#allocation3], 0 }
   0x3   :  { %11 = vsyncpa [#allocation3 + $0x1], 0 }
   0x4   :  { %12 = vsyncpa [#allocation6], 0 }
   0x5   :  { %14 = vsyncpa [#allocation6 + $0x1], 0 }
   0x6   :  { %15 = vsyncpa [#allocation4], 0 }
   0x7   :  { %17 = vsyncpa [#allocation4 + $0x1], 0  ;;  %s1107_s15 = smov 0   ;;  %s1109_s16 = smov 0  }
   0x8   :  { %s1111_s17 = smov 0   ;;  %s1113_s18 = smov 0  }
   0x9   :  { %s1115_s19 = smov 0   ;;  %s1117_s20 = smov 0  }
   0xa LB: > { %1396 = sst [smem:[#allocation13_spill]] %s1067_s19  ;;  %s1138_s21 = sadd.s32 4294967295, %s1071_s20   ;;  %s1071_s20 = sphi %s1117_s20, %s23_s20   ;;  %s1067_s19 = sphi %s1115_s19, %s1415_s19   ;;  %s1063_s18 = sphi %s1113_s18, %s1414_s18   ;;  %s1059_s17 = sphi %s1111_s17, %s1418_s17   ;;  %s1055_s16 = sphi %s1109_s16, %s1417_s16   ;;  %s1051_s15 = sphi %s1107_s15, %s1416_s15  }
   0xb   : > { %s637_s22 = sadd.s32 4294967294, %s1071_s20   ;;  %p55_p0 = scmp.ne.s32.totalorder %s1055_s16, %s1051_s15 }
   0xc   : > { %p1389_p1 = scmp.eq.s32.totalorder %s1138_s21, 0  ;;  %p167_p3 = scmp.eq.s32.totalorder %s637_s22, 1 }
   0xd   : > { %p638_p5 = scmp.ge.s32.totalorder %s1071_s20, 1  ;;  %p174_p7 = scmp.lt.s32.totalorder %s1071_s20, 3 }
   0xe   : > { %p1147_p4 = por %p1389_p1, %p55_p0  ;;  %p1152_p6 = por %p167_p3, %p55_p0 }
   0xf   : > { %p1157_p8 = pnand %p638_p5, %p174_p7  ;;  %s1073_s26 = smov [#allocation7]  }
  0x10   : > { %s1397_s23 = scalar_select %p1147_p4, 1, 0 }
  0x11   : > { %s1398_s24 = scalar_select %p1152_p6, 1, 0 }
  0x12   : > { %s1399_s25 = scalar_select %p1157_p8, 1, 0 }
  0x13   : > { %s188_s27 = sshll.u32 %s1073_s26, 4  ;;  %p820_p9 = pneg %p1157_p8  ;;  %s189_s27 = int_to_ptr.vmem [resolvable:$true] %s188_s27 }
  0x14   : > { %s35_s29 = sadd.s32 1, %s1067_s19  ;;  %s1401_s2 = sld [smem:[#allocation15_spill]] }
  0x15   : > { %p1166_p11 = pnand %p820_p9, %p1389_p1 }
  0x17   : > { %p895_p13 = pneg %p1166_p11 }
  0x1a   : > { %s893_s6 = scalar_lea.hbm %s1401_s2, 4096 }
  0x1b   : > { %p894_p12 = scmp.ne.s32.totalorder %s1401_s2, %s893_s6  ;;  %p900_p5 = scmp.lt.u32.totalorder %s893_s6, %s1401_s2 }
  0x1d   : > { %p896_p0 = pnand %p895_p13, %p894_p12 }
  0x1f   : > { %p897_p3 = pneg %p896_p0 }
  0x21   : > { %p902_p7 = pnand %p900_p5, %p897_p3 }
  0x23   : > { %905 = shalt.err (!%p902_p7)
}
  0x24   : > { %s906_s11 = scalar_lea.vmem %s189_s27, 4096  ;;  %p914_p2 = scmp.lt.s32.totalorder %s189_s27, %s189_s27 }
  0x25   : > { %p907_p9 = scmp.ne.s32.totalorder %s189_s27, %s906_s11  ;;  %p915_p6 = scmp.lt.s32.totalorder %s906_s11, %s906_s11 }
  0x27   : > { %p909_p10 = pnand %p907_p9, %p895_p13  ;;  %p916_p4 = por %p915_p6, %p914_p2 }
  0x29   : > { %p910_p1 = pneg %p909_p10 }
  0x2b   : > { %p917_p8 = pnand %p916_p4, %p910_p1 }
  0x2d   : > { %920 = shalt.err (!%p917_p8)
}
  0x2e   : > { %s1074_s12 = smov 128   ;;  %s1075_s13 = smov 8  }
  0x2f   : > { %823 = dma.hbm_to_vmem [thread:$0]  (!%p1166_p11), %s1401_s2, 4096, %s189_s27, [#allocation6], %s1074_s12, %s1074_s12, %s1075_s13  }
  0x30   : > { %p37_p1 = scmp.ge.s32.totalorder %s35_s29, 2  ;;  %s42_s26 = sadd.s32 1, %s1059_s17 }
  0x31   : > { %p49_p2 = scmp.ne.s32.totalorder %s1059_s17, %s1055_s16  ;;  %p50_p4 = scmp.eq.s32.totalorder %s1071_s20, 0 }
  0x32   : > { %s1420_s29 = smov (%p37_p1, %s35_s29), 0  ;;  %p1404_p8 = scmp.eq.s32.totalorder %s1138_s21, 1 }
  0x33   : > { %1402 = sst [smem:[#allocation14_spill]] %s1420_s29  ;;  %p1193_p6 = por %p50_p4, %p49_p2 }
  0x34   : > { %p1199_p10 = por %p1404_p8, %p49_p2  ;;  %s39_s5 = ssub.s32 %s1067_s19, %s1420_s29 }
  0x35   : > { %p836_p11 = scmp.lt.s32.totalorder %s1071_s20, 2  ;;  %p40_p12 = scmp.eq.s32.totalorder %s39_s5, 0 }
  0x36   : > { %s1405_s28 = scalar_select %p1199_p10, 1, 0 }
  0x37   : > { %s208_s27 = sand.u32 1, %s1059_s17   ;;  %s643_s8 = sshll.u32 %s1067_s19, 7 }
  0x38   : > { %s1207_s6 = sshll.u32 %s208_s27, 3  ;;  %s1216_s11 = scalar_lea.hbm %s1384_s0, %s643_s8 }
  0x39   : > { %s1210_s7 = scalar_select %p40_p12, %s1059_s17, %s42_s26  }
  0x3a   : > { %s212_s12 = scalar_lea.vmem [#allocation2], %s1207_s6  ;;  %p1223_p13 = pnand %p836_p11, %p1193_p6 }
  0x3b   : > { %s219_s13 = sshll.u32 %s212_s12, 4  ;;  %s1230_s5 = scalar_lea.hbm %s1385_s1, %s643_s8  ;;  %s1219_s13 = int_to_ptr.vmem [resolvable:$true] %s219_s13 }
  0x3c   : > { %s226_s9 = sand.u32 1, %s1071_s20   ;;  %s209_s10 = scalar_lea.sflag [#allocation3], %s208_s27 }
  0x3d   : > { %s921_s2 = scalar_lea.hbm %s1216_s11, 128  ;;  %p923_p3 = pneg %p1223_p13 }
  0x3e   : > { %p922_p0 = scmp.ne.s32.totalorder %s1216_s11, %s921_s2  ;;  %s926_s29 = scalar_lea.hbm %s1384_s0, 256 }
  0x3f   : > { %p927_p9 = scmp.lt.u32.totalorder %s1216_s11, %s1384_s0  ;;  %p928_p1 = scmp.lt.u32.totalorder %s926_s29, %s921_s2 }
  0x40   : > { %p924_p5 = pnand %p923_p3, %p922_p0  ;;  %p930_p4 = scmp.lt.u32.totalorder %s921_s2, %s1216_s11 }
  0x41   : > { %p929_p2 = por %p928_p1, %p927_p9 }
  0x42   : > { %p925_p7 = pneg %p924_p5 }
  0x43   : > { %p931_p6 = por %p930_p4, %p929_p2 }
  0x45   : > { %p932_p8 = pnand %p931_p6, %p925_p7 }
  0x47   : > { %935 = shalt.err (!%p932_p8)
}
  0x48   : > { %s936_s27 = scalar_lea.vmem %s1219_s13, 128  ;;  %s1076_s8 = smov [#allocation2]  }
  0x49   : > { %p937_p11 = scmp.ne.s32.totalorder %s1219_s13, %s936_s27  ;;  %s941_s26 = sshll.u32 %s1076_s8, 4  ;;  %s942_s26 = int_to_ptr.vmem [resolvable:$false] %s941_s26 }
  0x4a   : > { %s943_s19 = scalar_lea.vmem %s942_s26, 256  ;;  %p944_p5 = scmp.lt.s32.totalorder %s1219_s13, %s942_s26 }
  0x4b   : > { %p939_p12 = pnand %p937_p11, %p923_p3  ;;  %p945_p9 = scmp.lt.s32.totalorder %s943_s19, %s936_s27 }
  0x4d   : > { %p940_p0 = pneg %p939_p12  ;;  %p946_p1 = por %p945_p9, %p944_p5 }
  0x4f   : > { %p947_p2 = pnand %p946_p1, %p940_p0 }
  0x51   : > { %950 = shalt.err (!%p947_p2)
}
  0x52   : > { %827 = dma.hbm_to_vmem [thread:$0]  (!%p1223_p13), %s1216_s11, 128, %s1219_s13, %s209_s10  }
  0x53   : > { %s230_s2 = scalar_lea.vmem [#allocation5], %s1207_s6  ;;  %s227_s30 = scalar_lea.sflag [#allocation6], %s226_s9 }
  0x54   : > { %s238_s29 = sshll.u32 %s230_s2, 4  ;;  %s951_s12 = scalar_lea.hbm %s1230_s5, 128  ;;  %s239_s29 = int_to_ptr.vmem [resolvable:$true] %s238_s29 }
  0x55   : > { %p952_p7 = scmp.ne.s32.totalorder %s1230_s5, %s951_s12  ;;  %s956_s8 = scalar_lea.hbm %s1385_s1, 256 }
  0x56   : > { %p957_p8 = scmp.lt.u32.totalorder %s1230_s5, %s1385_s1  ;;  %p958_p11 = scmp.lt.u32.totalorder %s956_s8, %s951_s12 }
  0x57   : > { %p954_p4 = pnand %p952_p7, %p923_p3  ;;  %p960_p0 = scmp.lt.u32.totalorder %s951_s12, %s1230_s5 }
  0x58   : > { %p959_p12 = por %p958_p11, %p957_p8 }
  0x59   : > { %p955_p6 = pneg %p954_p4 }
  0x5a   : > { %p961_p5 = por %p960_p0, %p959_p12 }
  0x5c   : > { %p962_p9 = pnand %p961_p5, %p955_p6 }
  0x5e   : > { %965 = shalt.err (!%p962_p9)
}
  0x5f   : > { %s966_s6 = scalar_lea.vmem %s239_s29, 128  ;;  %s1077_s11 = smov [#allocation5]  }
  0x60   : > { %p967_p1 = scmp.ne.s32.totalorder %s239_s29, %s966_s6  ;;  %s971_s13 = sshll.u32 %s1077_s11, 4  ;;  %s972_s13 = int_to_ptr.vmem [resolvable:$false] %s971_s13 }
  0x61   : > { %s973_s9 = scalar_lea.vmem %s972_s13, 256  ;;  %p974_p4 = scmp.lt.s32.totalorder %s239_s29, %s972_s13 }
  0x62   : > { %p969_p2 = pnand %p967_p1, %p923_p3  ;;  %p975_p10 = scmp.lt.s32.totalorder %s973_s9, %s966_s6 }
  0x64   : > { %p970_p7 = pneg %p969_p2  ;;  %p976_p8 = por %p975_p10, %p974_p4 }
  0x66   : > { %p977_p11 = pnand %p976_p8, %p970_p7 }
  0x68   : > { %980 = shalt.err (!%p977_p11)
}
  0x69   : > { %830 = dma.hbm_to_vmem [thread:$0]  (!%p1223_p13), %s1230_s5, 128, %s239_s29, %s227_s30  }
  0x6a   : > { %p1407_p6 = scmp.ne.s32.totalorder %s1399_s25, 0 }
  0x6b   : > { %s1283_s10 = sand.u32 (!%p1407_p6), 1, %s1055_s16   ;;  %p1408_p10 = scmp.ne.s32.totalorder (!%p1407_p6), %s1397_s23, 0 }
  0x6c   : > { %247 = sbr.rel (%p1407_p6) target bundleno = 388 (0x184), region = 36  ;;  %s1286_s2 = sshll.u32 (!%p1407_p6), %s1283_s10, 3 }
  0x6d   : > { %s250_s12 = scalar_lea.sflag (!%p1407_p6), [#allocation3], %s1283_s10  ;;  %s253_s22 = scalar_lea.vmem (!%p1407_p6), [#allocation2], %s1286_s2 }
  0x73   : > { %1034 = dma.done.wait (%p1408_p10), %s250_s12, 128  }
  0x74   : > { %1036 = vsyncadd (%p1408_p10), %s250_s12, 4294967168  ;;  %s258_s25 = sand.u32 1, %s1138_s21   ;;  %s262_s5 = scalar_lea.vmem [#allocation5], %s1286_s2 }
  0x75   : > { %s259_s14 = scalar_lea.sflag [#allocation6], %s258_s25 }
  0x76   : > { %1038 = dma.done.wait (%p1408_p10), %s259_s14, 128  }
  0x77   : > { %1040 = vsyncadd (%p1408_p10), %s259_s14, 4294967168  ;;  %p1409_p13 = scmp.eq.s32.totalorder %s1138_s21, 0 }
  0x79   : > { %1042 = dma.done.wait (%p1409_p13), [#allocation6], 4096   ;;  %p1410_p3 = pmov %p1409_p13 }
  0x7a   : > { %v1078_v0 = vmov 0.0|0.0   ;;  %vm1079_vm0 = vmmov 0   ;;  %v1080_v1 = vmov 0.0   ;;  %v303_v2 = vld [vmem:[#allocation7] sm:$0xff]  ;;  %v304_v3 = vld [vmem:[#allocation7 + $0x8] sm:$0xff]  ;;  %v305_v7 = vld [vmem:[#allocation7 + $0x10] sm:$0xff] }
  0x7b   : > { %1044 = vsyncadd (%p1410_p3), [#allocation6], 4294963200  ;;  %762 = vmatprep.subr.bf16.mxu0 %v1078_v0  ;;  %786 = vmatprep.subr.bf16.mxu1 %v1078_v0  ;;  %v397_v4 = vld [vmem:[#allocation7 + $0x80] sm:$0xff]  ;;  %v763_v5 = vpack.c.bf16 %v304_v3, %v303_v2  ;;  %v398_v6 = vld [vmem:[#allocation7 + $0x88] sm:$0xff]  ;;  %s655_s27 = sshll.u32 %s1063_s18, 7  ;;  %s298_s8 = scalar_lea.vmem [#allocation8], %s1286_s2 }
  0x7c   : > { %724 = vmatprep.mubr.msk.f32.mxu0 %vm1079_vm0, %v1080_v1  ;;  %759 = vmatprep.mubr.msk.f32.mxu1 %vm1079_vm0, %v1080_v1  ;;  %v306_v8 = vld [vmem:[#allocation7 + $0x18] sm:$0xff]  ;;  %v787_v9 = vpack.c.bf16 %v398_v6, %v397_v4  ;;  %v399_v10 = vld [vmem:[#allocation7 + $0x90] sm:$0xff]  ;;  %v307_v14 = vld [vmem:[#allocation7 + $0x20] sm:$0xff]  ;;  %s510_s26 = sshll.u32 %s298_s8, 4  ;;  %s1335_s11 = scalar_lea.hbm %s1388_s4, %s655_s27  ;;  %s1337_s26 = int_to_ptr.vmem [resolvable:$true] %s510_s26 }
  0x7d   : > { %v400_v11 = vld [vmem:[#allocation7 + $0x98] sm:$0xff]  ;;  %764 = vmatpush3.bf16.msra.mxu0 %v763_v5  ;;  %v766_v12 = vpack.c.bf16 %v306_v8, %v305_v7  ;;  %v308_v15 = vld [vmem:[#allocation7 + $0x28] sm:$0xff]  ;;  %v401_v16 = vld [vmem:[#allocation7 + $0xa0] sm:$0xff]  ;;  %s496_s13 = scalar_lea.sflag [#allocation4], %s1283_s10  ;;  %s981_s9 = scalar_lea.vmem %s1337_s26, 128 }
  0x7e   : > { %788 = vmatpush3.bf16.msra.mxu1 %v787_v9  ;;  %765 = vmatprep.subr.bf16.mxu0 %v1078_v0  ;;  %v790_v13 = vpack.c.bf16 %v400_v11, %v399_v10  ;;  %v402_v17 = vld [vmem:[#allocation7 + $0xa8] sm:$0xff]  ;;  %v769_v18 = vpack.c.bf16 %v308_v15, %v307_v14  ;;  %v309_v20 = vld [vmem:[#allocation7 + $0x30] sm:$0xff]  ;;  %v310_v21 = vld [vmem:[#allocation7 + $0x38] sm:$0xff]  ;;  %p982_p12 = scmp.ne.s32.totalorder %s1337_s26, %s981_s9  ;;  %p1411_p0 = scmp.ne.s32.totalorder %s1405_s28, 0 }
  0x7f   : > { %789 = vmatprep.subr.bf16.mxu1 %v1078_v0  ;;  %v793_v19 = vpack.c.bf16 %v402_v17, %v401_v16  ;;  %v403_v22 = vld [vmem:[#allocation7 + $0xb0] sm:$0xff]  ;;  %v404_v23 = vld [vmem:[#allocation7 + $0xb8] sm:$0xff]  ;;  %v772_v24 = vpack.c.bf16 %v310_v21, %v309_v20  ;;  %v311_v26 = vld [vmem:[#allocation7 + $0x40] sm:$0xff]  ;;  %s1081_s18 = smov [#allocation8]  }
  0x80   : > { %v796_v25 = vpack.c.bf16 %v404_v23, %v403_v22  ;;  %v312_v27 = vld [vmem:[#allocation7 + $0x48] sm:$0xff]  ;;  %v405_v28 = vld [vmem:[#allocation7 + $0xc0] sm:$0xff]  ;;  %v313_v32 = vld [vmem:[#allocation7 + $0x50] sm:$0xff]  ;;  %p983_p5 = pnand %p982_p12, %p1411_p0  ;;  %s985_s2 = sshll.u32 %s1081_s18, 4  ;;  %s986_s2 = int_to_ptr.vmem [resolvable:$false] %s985_s2 }
  0x81   : > { %767 = vmatpush3.bf16.msra.mxu0 %v766_v12  ;;  %v406_v29 = vld [vmem:[#allocation7 + $0xc8] sm:$0xff]  ;;  %v775_v30 = vpack.c.bf16 %v312_v27, %v311_v26  ;;  %v314_v33 = vld [vmem:[#allocation7 + $0x58] sm:$0xff]  ;;  %v407_v34 = vld [vmem:[#allocation7 + $0xd0] sm:$0xff]  ;;  %s987_s12 = scalar_lea.vmem %s986_s2, 256  ;;  %p988_p1 = scmp.lt.s32.totalorder %s1337_s26, %s986_s2 }
  0x82   : > { %791 = vmatpush3.bf16.msra.mxu1 %v790_v13  ;;  %768 = vmatprep.subr.bf16.mxu0 %v1078_v0  ;;  %v799_v31 = vpack.c.bf16 %v406_v29, %v405_v28  ;;  %v408_v35 = vld [vmem:[#allocation7 + $0xd8] sm:$0xff]  ;;  %v778_v36 = vpack.c.bf16 %v314_v33, %v313_v32  ;;  %v315_v38 = vld [vmem:[#allocation7 + $0x60] sm:$0xff]  ;;  %v316_v39 = vld [vmem:[#allocation7 + $0x68] sm:$0xff]  ;;  %p984_p9 = pneg %p983_p5  ;;  %p989_p2 = scmp.lt.s32.totalorder %s987_s12, %s981_s9 }
  0x83   : > { %792 = vmatprep.subr.bf16.mxu1 %v1078_v0  ;;  %v802_v37 = vpack.c.bf16 %v408_v35, %v407_v34  ;;  %v409_v40 = vld [vmem:[#allocation7 + $0xe0] sm:$0xff]  ;;  %v410_v41 = vld [vmem:[#allocation7 + $0xe8] sm:$0xff]  ;;  %v781_v42 = vpack.c.bf16 %v316_v39, %v315_v38  ;;  %v317_v44 = vld [vmem:[#allocation7 + $0x70] sm:$0xff] }
  0x84   : > { %v805_v43 = vpack.c.bf16 %v410_v41, %v409_v40  ;;  %v318_v45 = vld [vmem:[#allocation7 + $0x78] sm:$0xff]  ;;  %v411_v46 = vld [vmem:[#allocation7 + $0xf0] sm:$0xff]  ;;  %v302_v50 = vld [vmem:[%s253_s22] sm:$0xff]  ;;  %p990_p7 = por %p989_p2, %p988_p1 }
  0x85   : > { %770 = vmatpush3.bf16.msra.mxu0 %v769_v18  ;;  %v412_v47 = vld [vmem:[#allocation7 + $0xf8] sm:$0xff]  ;;  %v784_v48 = vpack.c.bf16 %v318_v45, %v317_v44  ;;  %v651_v51 = vld [vmem:[%s1387_s3] ss:$0 sm:$0xff]  ;;  %v653_v52 = vld [vmem:[%s1387_s3 + $0x1] ss:$0 sm:$0xff] }
  0x86   : > { %794 = vmatpush3.bf16.msra.mxu1 %v793_v19  ;;  %771 = vmatprep.subr.bf16.mxu0 %v1078_v0  ;;  %v808_v49 = vpack.c.bf16 %v412_v47, %v411_v46  ;;  %v491_v54 = vld [vmem:[%s262_s5] sm:$0xff]  ;;  %p991_p4 = pnand %p990_p7, %p984_p9 }
  0x87   : > { %795 = vmatprep.subr.bf16.mxu1 %v1078_v0 }
  0x89   : > { %773 = vmatpush3.bf16.msra.mxu0 %v772_v24 }
  0x8a   : > { %797 = vmatpush3.bf16.msra.mxu1 %v796_v25  ;;  %774 = vmatprep.subr.bf16.mxu0 %v1078_v0 }
  0x8b   : > { %798 = vmatprep.subr.bf16.mxu1 %v1078_v0 }
  0x8d   : > { %776 = vmatpush3.bf16.msra.mxu0 %v775_v30 }
  0x8e   : > { %800 = vmatpush3.bf16.msra.mxu1 %v799_v31  ;;  %777 = vmatprep.subr.bf16.mxu0 %v1078_v0 }
  0x8f   : > { %801 = vmatprep.subr.bf16.mxu1 %v1078_v0 }
  0x91   : > { %779 = vmatpush3.bf16.msra.mxu0 %v778_v36 }
  0x92   : > { %803 = vmatpush3.bf16.msra.mxu1 %v802_v37  ;;  %780 = vmatprep.subr.bf16.mxu0 %v1078_v0 }
  0x93   : > { %804 = vmatprep.subr.bf16.mxu1 %v1078_v0 }
  0x95   : > { %782 = vmatpush3.bf16.msra.mxu0 %v781_v42 }
  0x96   : > { %806 = vmatpush3.bf16.msra.mxu1 %v805_v43  ;;  %783 = vmatprep.subr.bf16.mxu0 %v1078_v0 }
  0x97   : > { %807 = vmatprep.subr.bf16.mxu1 %v1078_v0 }
  0x99   : > { %785 = vmatpush3.bf16.msra.mxu0 %v784_v48 }
  0x9a   : > { %809 = vmatpush3.bf16.msra.mxu1 %v808_v49 }
  0x9c   : > { %725 = vmatmul.mubr.f32.vlgmr.msra.gmra.mrb[0].mxu0 %v302_v50 }
  0x9d   : > { %760 = vmatmul.mubr.f32.vlgmr.msra.gmra.mrb[0].mxu1 %v302_v50 }
 0x16f   : > { %v392_v53 = vpop.f32.mrb[0].mxu0 }
 0x170   : > { %v393_v55 = vadd.f32 %v651_v51, %v392_v53  ;;  %v726_v56 = vpop.f32.mrb[1].mxu0  ;;  %v487_v57 = vpop.f32.mrb[0].mxu1 }
 0x171   : > { %v488_v58 = vadd.f32 %v653_v52, %v487_v57  ;;  %v761_v59 = vpop.f32.mrb[1].mxu1 }
 0x172   : > { %v492_v60 = vmul.f32 %v491_v54, %v393_v55 }
 0x174   : > { %v493_v61 = vadd.f32 %v492_v60, %v488_v58 }
 0x176   : > { %494 = vst [vmem:[%s298_s8] sm:$0xff] %v493_v61 }
 0x177   : > { %994 = shalt.err (!%p991_p4)
}
 0x178   : > { %s995_s10 = scalar_lea.hbm %s1335_s11, 128  ;;  %s999_s14 = scalar_lea.hbm %s1388_s4, 256 }
 0x179   : > { %p996_p8 = scmp.ne.s32.totalorder %s1335_s11, %s995_s10  ;;  %p1000_p10 = scmp.lt.u32.totalorder %s1335_s11, %s1388_s4 }
 0x17a   : > { %p1001_p13 = scmp.lt.u32.totalorder %s999_s14, %s995_s10  ;;  %p1003_p12 = scmp.lt.u32.totalorder %s995_s10, %s1335_s11 }
 0x17b   : > { %p997_p11 = pnand %p996_p8, %p1411_p0 }
 0x17c   : > { %p1002_p3 = por %p1001_p13, %p1000_p10 }
 0x17d   : > { %p998_p6 = pneg %p997_p11 }
 0x17e   : > { %p1004_p5 = por %p1003_p12, %p1002_p3 }
 0x180   : > { %p1005_p9 = pnand %p1004_p5, %p998_p6 }
 0x182   : > { %1008 = shalt.err (!%p1005_p9)
}
 0x183   : > { %818 = dma.vmem_to_hbm [thread:$0]  (%p1411_p0), %s1337_s26, 128, %s1335_s11, %s496_s13  }
 0x184 PF: > { %s522_s23 = sand.u32 1, %s1051_s15   ;;  %p1412_p1 = scmp.ne.s32.totalorder %s1398_s24, 0 }
 0x185   : > { %p1413_p2 = scmp.ge.s32.totalorder %s1071_s20, 2  ;;  %s523_s29 = scalar_lea.sflag [#allocation4], %s522_s23 }
 0x187   : > { %p832_p7 = pnand %p1413_p2, %p1412_p1 }
 0x189   : > { %1046 = dma.done.wait (!%p832_p7), %s523_s29, 128  }
 0x18a   : > { %1048 = vsyncadd (!%p832_p7), %s523_s29, 4294967168  ;;  %s23_s20 = sadd.s32 1, %s1071_s20   ;;  %s1414_s18 = sld [smem:[#allocation13_spill]] }
 0x18b   : > { %p20_p4 = scmp.ge.s32.totalorder %s23_s20, 4   ;;  %s1415_s19 = sld [smem:[#allocation14_spill]] }
 0x18c   : > { %s1416_s15 = smov %s1055_s16  ;;  %s1417_s16 = smov %s1059_s17 }
 0x18d   : > { %s1418_s17 = smov %s1210_s7  ;;  %22 = sbr.rel (!%p20_p4) target bundleno = 10 (0xa), region = 104 }
 0x194   :  { %528 = vsyncpa [#allocation3], 1 }
 0x195   :  { %530 = vsyncpa [#allocation3 + $0x1], 1 }
 0x196   :  { %531 = vsyncpa [#allocation6], 1 }
 0x197   :  { %533 = vsyncpa [#allocation6 + $0x1], 1 }
 0x198   :  { %534 = vsyncpa [#allocation4], 1 }
 0x199   :  { %536 = vsyncpa [#allocation4 + $0x1], 1 }

</bundles_post_ra>
